<compile_context>
chip_gen: v6e
topology: v6e:2x2x1
jax: 0.10.0
libtpu: 0.0.40
codegen_flags: <defaults>
</compile_context>

<pallas_src>
import jax
import jax.numpy as jnp
from jax.experimental import pallas as pl
from jax.experimental.pallas import tpu as pltpu


def _round_up(x, m):
    return ((x + m - 1) // m) * m


_SMEM_SPEC = pl.BlockSpec(memory_space=pltpu.MemorySpace.SMEM)


# ---------------------------------------------------------------------------
# Kernels
# ---------------------------------------------------------------------------

def _linear_rowwise_kernel(x_ref, w_ref, b_ref, o_ref):
    """General / fast path: x (tb, D) * w (1, D) -> row sums (tb, 1)."""
    x = x_ref[...].astype(jnp.float32)                 # (tb, D)
    w = w_ref[...]                                     # (1, D) f32, broadcast over rows
    acc = jnp.sum(x * w, axis=-1, keepdims=True)       # VPU mul + XLU lane reduce
    o_ref[...] = (acc + b_ref[0]).astype(o_ref.dtype)


def _linear_packed_kernel(xp_ref, wsel_ref, b_ref, o_ref):
    """Packed small-D path: xp (tr, 128) @ wsel (128, P) -> (tr, P) on the MXU."""
    x = xp_ref[...].astype(jnp.float32)                # (tr, 128), lanes fully dense
    acc = jnp.dot(x, wsel_ref[...], preferred_element_type=jnp.float32)
    o_ref[...] = (acc + b_ref[0]).astype(o_ref.dtype)


# ---------------------------------------------------------------------------
# Tiling helper
# ---------------------------------------------------------------------------

def _choose_rows(num_rows, bytes_per_row, quantum, target_bytes=4 << 20):
    """Rows per pipelined input buffer: ~4 MiB, but keep >=2 grid steps when possible
    (double-buffering + megacore sharding of the 'parallel' batch axis on v7x)."""
    t = (target_bytes // max(1, bytes_per_row)) // quantum * quantum
    t = max(quantum, t)
    half = _round_up(pl.cdiv(num_rows, 2), quantum)
    return max(quantum, min(t, half))


# ---------------------------------------------------------------------------
# Wrapper
# ---------------------------------------------------------------------------

def style_predictor_forward(embed, weight, bias):
    """embed [B, D]; weight [1, D]; bias [1]  ->  [B, 1]   (== nn.Linear(D, 1) forward)."""
    B, D = embed.shape
    out_dtype = embed.dtype
    in_item = jnp.dtype(embed.dtype).itemsize
    out_item = jnp.dtype(out_dtype).itemsize
    lane_D = _round_up(D, 128)

    w_row = weight.reshape(1, D).astype(jnp.float32)
    b_smem = bias.reshape(1).astype(jnp.float32)

    # ----- tiny inputs: single block, no grid / pipeline overhead ---------------
    in_bytes_padded = _round_up(B, 8) * lane_D * in_item
    if in_bytes_padded <= (1 << 20) or B < 8:
        # TODO(synk): extremely large embed_dim with a tiny batch would need D-tiling.
        needed = (in_bytes_padded + _round_up(B, 8) * 128 * out_item
                  + 8 * lane_D * 4 + (2 << 20))
        return pl.pallas_call(
            _linear_rowwise_kernel,
            out_shape=jax.ShapeDtypeStruct((B, 1), out_dtype),
            in_specs=[
                pl.BlockSpec(memory_space=pltpu.MemorySpace.VMEM),
                pl.BlockSpec(memory_space=pltpu.MemorySpace.VMEM),
                _SMEM_SPEC,
            ],
            out_specs=pl.BlockSpec(memory_space=pltpu.MemorySpace.VMEM),
            compiler_params=pltpu.CompilerParams(
                vmem_limit_bytes=int(min(needed, 64 << 20))),
        )(embed, w_row, b_smem)

    # ----- lane-packed path: D divides 128 (typical small embed dims) -----------
    if D <= 128 and 128 % D == 0:
        P = 128 // D                                  # rows packed per 128-lane row
        Bp = _round_up(B, P)
        if Bp != B:                                   # rare: only when B % P != 0
            embed = jnp.pad(embed, ((0, Bp - B), (0, 0)))
        Rp = Bp // P
        packed = embed.reshape(Rp, 128)               # free row-major merge (no copy)

        # (128, P) selection matrix: wsel[j*D + d, j] = w[d]
        lane = jnp.arange(128)
        wsel = jnp.where(
            (lane // D)[:, None] == jnp.arange(P)[None, :],
            jnp.tile(w_row.reshape(-1), P)[:, None],
            jnp.float32(0.0),
        ).astype(jnp.float32)

        tr = _choose_rows(Rp, 128 * in_item, quantum=256)   # packed rows per tile
        grid = (pl.cdiv(Rp, tr),)                           # ragged last block is fine

        # VMEM footprint with padded tile shapes (output lanes pad P -> 128).
        needed = (2 * tr * 128 * in_item            # double-buffered packed input tiles
                  + 2 * tr * 128 * out_item         # output tiles (lane padded)
                  + 2 * 128 * 128 * 4               # resident selection matrix
                  + (4 << 20))                      # headroom / internal scratch

        out = pl.pallas_call(
            _linear_packed_kernel,
            out_shape=jax.ShapeDtypeStruct((Rp, P), out_dtype),
            grid_spec=pltpu.PrefetchScalarGridSpec(
                num_scalar_prefetch=0,
                grid=grid,
                in_specs=[
                    pl.BlockSpec((tr, 128), lambda i: (i, 0)),  # packed embed tiles
                    pl.BlockSpec((128, P), lambda i: (0, 0)),   # resident weight matrix
                    _SMEM_SPEC,                                 # bias scalar in SMEM
                ],
                out_specs=pl.BlockSpec((tr, P), lambda i: (i, 0)),
            ),
            compiler_params=pltpu.CompilerParams(
                dimension_semantics=("parallel",),              # megacore on v7x
                vmem_limit_bytes=int(min(needed, 56 << 20)),
            ),
        )(packed, wsel, b_smem)
        return out.reshape(-1)[:B].reshape(B, 1)

    # ----- general path (D >= 128 or D not dividing 128) ------------------------
    tb = _choose_rows(B, lane_D * in_item, quantum=256)
    tb = min(tb, max(8, (B // 8) * 8))
    grid = (pl.cdiv(B, tb),)                                   # ragged last block OK
    needed = (2 * tb * lane_D * in_item
              + 2 * tb * 128 * out_item
              + 2 * 8 * lane_D * 4
              + (4 << 20))
    return pl.pallas_call(
        _linear_rowwise_kernel,
        out_shape=jax.ShapeDtypeStruct((B, 1), out_dtype),
        grid_spec=pltpu.PrefetchScalarGridSpec(
            num_scalar_prefetch=0,
            grid=grid,
            in_specs=[
                pl.BlockSpec((tb, D), lambda i: (i, 0)),        # embed: batch-tiled
                pl.BlockSpec((1, D), lambda i: (0, 0)),         # weight row: resident
                _SMEM_SPEC,                                     # bias scalar in SMEM
            ],
            out_specs=pl.BlockSpec((tb, 1), lambda i: (i, 0)),
        ),
        compiler_params=pltpu.CompilerParams(
            dimension_semantics=("parallel",),
            vmem_limit_bytes=int(min(needed, 56 << 20)),
        ),
    )(embed, w_row, b_smem)


# ---------------------------------------------------------------------------
# Demo / self-check
# ---------------------------------------------------------------------------

def _ref_linear(x, W, b):
    # Exact f32 elementwise reference (same math as PyTorch nn.Linear forward).
    return jnp.sum(x.astype(jnp.float32) * W.astype(jnp.float32), axis=-1,
                   keepdims=True) + b.astype(jnp.float32)


if __name__ == "__main__":
    key = jax.random.PRNGKey(0)

    # --- primary small example (matches the module: embed_dim=32, batch=8) -----
    embed_dim, batch = 32, 8
    k_x, k_w, k_b, k2, k3, k4, k5 = jax.random.split(key, 7)
    bound = 1.0 / (embed_dim ** 0.5)
    W = jax.random.uniform(k_w, (1, embed_dim), jnp.float32, -bound, bound)
    b = jax.random.uniform(k_b, (1,), jnp.float32, -bound, bound)
    x = jax.random.normal(k_x, (batch, embed_dim), jnp.float32)

    out = jax.block_until_ready(style_predictor_forward(x, W, b))
    assert out.shape == (batch, 1)
    assert jnp.allclose(out, _ref_linear(x, W, b), atol=1e-3, rtol=1e-3)

    # --- exercise the lane-packed tiled path (D=32, larger ragged batch) -------
    x2 = jax.random.normal(k2, (20000, embed_dim), jnp.float32)
    out2 = jax.block_until_ready(style_predictor_forward(x2, W, b))
    assert out2.shape == (20000, 1)
    assert jnp.allclose(out2, _ref_linear(x2, W, b), atol=1e-3, rtol=1e-3)

    # --- exercise the general tiled path (D=256) --------------------------------
    D3, B3 = 256, 3000
    bound3 = 1.0 / (D3 ** 0.5)
    W3 = jax.random.uniform(k3, (1, D3), jnp.float32, -bound3, bound3)
    b3 = jax.random.uniform(k4, (1,), jnp.float32, -bound3, bound3)
    x3 = jax.random.normal(k5, (B3, D3), jnp.float32)
    out3 = jax.block_until_ready(style_predictor_forward(x3, W3, b3))
    assert out3.shape == (B3, 1)
    assert jnp.allclose(out3, _ref_linear(x3, W3, b3), atol=1e-3, rtol=1e-3)

    print("KERNEL_OK")
</pallas_src>

<mosaic_0001>
module attributes {stable_mosaic.version = 11 : i64} {
  func.func @_linear_rowwise_kernel(%arg0: memref<8x32xf32, #tpu.memory_space<vmem>>, %arg1: memref<1x32xf32, #tpu.memory_space<vmem>>, %arg2: memref<1xf32, #tpu.memory_space<smem>>, %arg3: memref<8x1xf32, #tpu.memory_space<vmem>>) attributes {dimension_semantics = [], scalar_prefetch = 0 : i64, scratch_operands = 0 : i64, tpu.core_type = #tpu.core_type<tc>} {
    %c0 = arith.constant 0 : index
    %c0_0 = arith.constant 0 : index
    %0 = vector.load %arg0[%c0, %c0_0] : memref<8x32xf32, #tpu.memory_space<vmem>>, vector<8x32xf32>
    %c0_1 = arith.constant 0 : index
    %c0_2 = arith.constant 0 : index
    %1 = vector.load %arg1[%c0_1, %c0_2] : memref<1x32xf32, #tpu.memory_space<vmem>>, vector<1x32xf32>
    %2 = vector.broadcast %1 : vector<1x32xf32> to vector<8x32xf32>
    %3 = arith.mulf %0, %2 : vector<8x32xf32>
    %cst = arith.constant dense<0.000000e+00> : vector<8xf32>
    %4 = vector.multi_reduction <add>, %3, %cst [1] : vector<8x32xf32> to vector<8xf32>
    %5 = vector.shape_cast %4 : vector<8xf32> to vector<8x1xf32>
    %c0_3 = arith.constant 0 : index
    %6 = memref.load %arg2[%c0_3] : memref<1xf32, #tpu.memory_space<smem>>
    %7 = vector.broadcast %6 : f32 to vector<8x1xf32>
    %8 = arith.addf %5, %7 : vector<8x1xf32>
    %c0_4 = arith.constant 0 : index
    %c0_5 = arith.constant 0 : index
    %9 = vector.load %arg3[%c0_4, %c0_5] : memref<8x1xf32, #tpu.memory_space<vmem>>, vector<8x1xf32>
    tpu.vector_store %arg3[%c0_4, %c0_5], %8 {strides = array<i32>} : memref<8x1xf32, #tpu.memory_space<vmem>>, vector<8x1xf32>,
    return
  }
}

</mosaic_0001>

<bundles_post_ra>
// kernel: tpu_custom_call.1
= control target key start
LH: loop header
LB: loop body
LE: loop exit
PB: predicated region body
PF: predicated region fallthrough
CT: control target
= control target key end

     0   :  { %9 = vsyncpa [#allocation4], 0  ;;  %s74_s12 = smov [#allocation3]   ;;  %s107_s0 = inlined_call_operand.hbm [shape: f32[8,32], index: 0, kind: input, shape index: {}]   ;;  %s108_s1 = inlined_call_operand.vmem [shape: f32[1,32], index: 1, kind: input, shape index: {}]   ;;  %s109_s2 = inlined_call_operand.<no memory space> [shape: f32[1], index: 2, kind: input, shape index: {}]   ;;  %s110_s3 = inlined_call_operand.vmem [shape: f32[8,1], index: 3, kind: output, shape index: {}]  }
   0x1   :  { %s16_s13 = sshll.u32 %s74_s12, 4  ;;  %s17_s13 = int_to_ptr.vmem [resolvable:$true] %s16_s13 }
   0x2   :  { %s60_s14 = scalar_lea.vmem %s17_s13, 128  ;;  %p65_p1 = scmp.lt.s32.totalorder %s17_s13, %s17_s13 }
   0x3   :  { %p61_p0 = scmp.ne.s32.totalorder %s17_s13, %s60_s14  ;;  %p66_p2 = scmp.lt.s32.totalorder %s60_s14, %s60_s14 }
   0x5   :  { %p67_p3 = por %p66_p2, %p65_p1 }
   0x7   :  { %p68_p4 = pnand %p67_p3, %p61_p0 }
   0x9   :  { %71 = shalt.err (!%p68_p4)
}
   0xa   :  { %19 = dma.hbm_to_vmem [thread:$0]  %s107_s0, 128, %s17_s13, [#allocation4]  }
   0xb   :  { %72 = dma.done.wait [#allocation4], 128  }
   0xc   :  { %73 = vsyncadd [#allocation4], 4294967168  ;;  %v27_v0 = vld [vmem:[#allocation3] sm:$0xff]  ;;  %vm36_vm0 = vcmask 261120   ;;  %v41_v4 = vstv %s109_s2  ;;  %vm43_vm1 = vcmask 7168  }
   0xd   :  { %v50_v1 = vld [vmem:[%s108_s1] ss:$0 sm:$0xff] }
   0xe   :  { %v35_v2 = vmul.f32 %v50_v1, %v27_v0 }
  0x10   :  { %v37_v3 = vsel %vm36_vm0, %v35_v2, 0.0 }
  0x11   :  { %38 = vadd.xlane.f32.xlu0 %v37_v3 }
  0x9a   :  { %v39_v5 = vpop.xlane.xlu0 %38 }
  0x9b   :  { %v42_v6 = vadd.f32 %v41_v4, %v39_v5 }
  0x9d   :  { %44 = vst.msk [vmem:[%s110_s3] sm:$0xff] %vm43_vm1, %v42_v6 }
  0x9e   :  { %49 = vsyncpa [#allocation4], 1 }

</bundles_post_ra>
